<compile_context>
chip_gen: v5e
topology: v5e:2x2
jax: 0.10.0
libtpu: 0.0.40
codegen_flags: <defaults>
</compile_context>

<pallas_src>
import jax
import jax.numpy as jnp
from jax.experimental import pallas as pl
from jax.experimental.pallas import tpu as pltpu


def _embed_kernel(x_ref, o_ref):
    # x_ref: (C, TL) tile, o_ref: (TL, C) tile (batch dim squeezed away).
    # Ragged edge tiles are padded on read and masked on write by the pipeline,
    # so a pure transpose is correct with no explicit bounds handling.
    o_ref[...] = x_ref[...].T


# VMEM budget for the pipelined tile buffers (input buffers + double-buffered output).
# 12 MiB keeps the footprint inside v5e's 16 MiB default scoped-VMEM limit (the
# tightest default across v5e/v6e/v7x) without raising vmem_limit_bytes.
_VMEM_BUDGET_BYTES = 12 * 1024 * 1024
_IN_BUFFERS = 3   # requested input pipeline depth (falls back to 2 if unsupported)
_OUT_BUFFERS = 2


def _pick_tl(L, C, itemsize):
    """Largest 128-multiple TL under the dtype-aware cap and the VMEM budget.

    No divisibility requirement: the grid uses cdiv(L, TL) and the ragged edge tile
    is masked. If the whole L extent fits under both caps, a single full-extent block
    is used (legal for any L, footprint already budget-checked).
    """
    cap = 2048 if itemsize < 4 else 1024  # bigger DMA bursts for sub-32-bit dtypes
    by_vmem = _VMEM_BUDGET_BYTES // ((_IN_BUFFERS + _OUT_BUFFERS) * C * itemsize)
    tl = min(cap, by_vmem)
    if tl >= L:
        return L                              # full-extent L block, bounded by budget
    return max((tl // 128) * 128, 128)        # (8,128) rule; edge handled by masking


def _build_call(B, C, L, TL, dtype, itemsize, in_buffers):
    in_map = lambda b, l: (b, 0, l)
    if in_buffers > 2 and hasattr(pl, "Buffered"):
        in_spec = pl.BlockSpec((None, C, TL), in_map,
                               pipeline_mode=pl.Buffered(in_buffers))
    else:
        in_spec = pl.BlockSpec((None, C, TL), in_map)

    return pl.pallas_call(
        _embed_kernel,
        out_shape=jax.ShapeDtypeStruct((B, L, C), dtype),
        grid=(B, pl.cdiv(L, TL)),
        in_specs=[in_spec],
        out_specs=pl.BlockSpec((None, TL, C), lambda b, l: (b, l, 0)),
        compiler_params=pltpu.CompilerParams(
            dimension_semantics=("parallel", "parallel"),
        ),
        cost_estimate=pl.CostEstimate(
            flops=0,
            transcendentals=0,
            bytes_accessed=2 * B * C * L * itemsize,
        ),
    )


def patch_embed(x, embed_dim, norm=None):
    """PatchEmbed.forward: x (B, C, H, W) -> (B, H*W, C), with C == embed_dim."""
    B, C, H, W = x.shape
    assert C == embed_dim, "channel dim must equal embed_dim"
    L = H * W
    itemsize = jnp.dtype(x.dtype).itemsize

    x_flat = x.reshape(B, C, L)  # flatten(2): pure metadata reshape (glue, not compute)
    TL = _pick_tl(L, C, itemsize)

    try:
        out = _build_call(B, C, L, TL, x.dtype, itemsize, _IN_BUFFERS)(x_flat)
    except Exception:
        # pipeline_mode / Buffered(3) not supported on this jax/Mosaic version:
        # fall back to the default double-buffered pipeline (previously verified path).
        out = _build_call(B, C, L, TL, x.dtype, itemsize, 2)(x_flat)

    # TODO(synk): norm_layer is None by default; if provided it could be fused into the
    # kernel (full C is resident per output tile) instead of applied here.
    if norm is not None:
        out = norm(out)
    return out


if __name__ == "__main__":
    key = jax.random.PRNGKey(0)

    # Case 1: small shapes consistent with the module: B=2, embed_dim=32, 16x16 -> L=256.
    B, C, H, W = 2, 32, 16, 16
    x = jax.random.normal(key, (B, C, H, W), dtype=jnp.float32)
    out = jax.block_until_ready(patch_embed(x, embed_dim=C))
    ref = jnp.transpose(x.reshape(B, C, H * W), (0, 2, 1))
    assert out.shape == (B, H * W, C)
    assert jnp.array_equal(out, ref)

    # Case 2: L not a multiple of the tile (40x40 -> L=1600 > TL=1024), exercising the
    # cdiv grid + masked ragged-edge tile that replaced the old full-extent fallback.
    B2, C2, H2, W2 = 2, 32, 40, 40
    x2 = jax.random.normal(jax.random.PRNGKey(0), (B2, C2, H2, W2), dtype=jnp.float32)
    out2 = jax.block_until_ready(patch_embed(x2, embed_dim=C2))
    ref2 = jnp.transpose(x2.reshape(B2, C2, H2 * W2), (0, 2, 1))
    assert out2.shape == (B2, H2 * W2, C2)
    assert jnp.array_equal(out2, ref2)

    print("KERNEL_OK")
</pallas_src>

<mosaic_0001>
module attributes {stable_mosaic.version = 11 : i64} {
  func.func @_embed_kernel(%arg0: i32, %arg1: i32, %arg2: memref<1x32x256xf32, #tpu.memory_space<vmem>>, %arg3: memref<1x256x32xf32, #tpu.memory_space<vmem>>) attributes {dimension_semantics = [#tpu.dimension_semantics<parallel>, #tpu.dimension_semantics<parallel>], iteration_bounds = array<i64: 2, 1>, scalar_prefetch = 0 : i64, scratch_operands = 0 : i64, tpu.core_type = #tpu.core_type<tc>, window_params = [{transform_indices = @transform_0, window_bounds = array<i64: 1, 32, 256>}, {transform_indices = @transform_1, window_bounds = array<i64: 1, 256, 32>}]} {
    %c0 = arith.constant 0 : index
    %c0_0 = arith.constant 0 : index
    %c0_1 = arith.constant 0 : index
    %0 = vector.load %arg2[%c0, %c0_0, %c0_1] : memref<1x32x256xf32, #tpu.memory_space<vmem>>, vector<1x32x256xf32>
    %1 = vector.shape_cast %0 : vector<1x32x256xf32> to vector<32x256xf32>
    %2 = tpu.transpose %1, [1, 0] : vector<32x256xf32> -> vector<256x32xf32>
    %c0_2 = arith.constant 0 : index
    %c0_3 = arith.constant 0 : index
    %c0_4 = arith.constant 0 : index
    %3 = vector.load %arg3[%c0_2, %c0_3, %c0_4] : memref<1x256x32xf32, #tpu.memory_space<vmem>>, vector<1x256x32xf32>
    %4 = vector.shape_cast %3 : vector<1x256x32xf32> to vector<256x32xf32>
    %5 = vector.shape_cast %2 : vector<256x32xf32> to vector<1x256x32xf32>
    tpu.vector_store %arg3[%c0_2, %c0_3, %c0_4], %5 {strides = array<i32>} : memref<1x256x32xf32, #tpu.memory_space<vmem>>, vector<1x256x32xf32>,
    return
  }
  func.func @transform_0(%arg0: i32, %arg1: i32) -> (i32, i32, i32) {
    %c0_i32 = arith.constant 0 : i32
    %c0_i32_0 = arith.constant 0 : i32
    return %arg0, %c0_i32, %arg1 : i32, i32, i32
  }
  func.func @transform_1(%arg0: i32, %arg1: i32) -> (i32, i32, i32) {
    %c0_i32 = arith.constant 0 : i32
    %c0_i32_0 = arith.constant 0 : i32
    return %arg0, %arg1, %c0_i32 : i32, i32, i32
  }
}

</mosaic_0001>

<bundles_post_ra>
// kernel: tpu_custom_call.1
= control target key start
LH: loop header
LB: loop body
LE: loop exit
PB: predicated region body
PF: predicated region fallthrough
CT: control target
= control target key end

     0   :  { %6 = vsyncpa [#allocation3], 0  ;;  %s688_s0 = inlined_call_operand.hbm [shape: f32[2,32,256], index: 0, kind: input, shape index: {}]   ;;  %s689_s1 = inlined_call_operand.vmem [shape: f32[2,256,32], index: 1, kind: output, shape index: {}]  }
   0x1   :  { %8 = vsyncpa [#allocation3 + $0x1], 0  ;;  %s534_s6 = smov 0   ;;  %s536_s7 = smov 0  }
   0x2   :  { %s538_s8 = smov 0   ;;  %s540_s9 = smov 0  }
   0x3   :  { %s542_s10 = smov 0   ;;  %s544_s11 = smov 0  }
   0x4 LB: > { %s367_s12 = sadd.s32 4294967295, %s520_s11   ;;  %s26_s13 = sadd.s32 1, %s516_s10  ;;  %s520_s11 = sphi %s544_s11, %s14_s11   ;;  %s516_s10 = sphi %s542_s10, %s696_s10   ;;  %s512_s9 = sphi %s540_s9, %s695_s9   ;;  %s508_s8 = sphi %s538_s8, %s694_s8   ;;  %s504_s7 = sphi %s536_s7, %s693_s7   ;;  %s500_s6 = sphi %s534_s6, %s692_s6  }
   0x5   : > { %p28_p0 = scmp.ge.s32.totalorder %s26_s13, 2  ;;  %s35_s14 = sadd.s32 1, %s508_s8 }
   0x6   : > { %p42_p1 = scmp.ne.s32.totalorder %s508_s8, %s504_s7  ;;  %p43_p2 = scmp.eq.s32.totalorder %s520_s11, 0 }
   0x7   : > { %s698_s13 = smov (%p28_p0, %s26_s13), 0  ;;  %p48_p4 = scmp.ne.s32.totalorder %s504_s7, %s500_s6 }
   0x8   : > { %p570_p3 = por %p43_p2, %p42_p1  ;;  %s30_s16 = ssub.s32 %s516_s10, %s698_s13 }
   0x9   : > { %p49_p5 = scmp.eq.s32.totalorder %s367_s12, 0  ;;  %p33_p6 = scmp.eq.s32.totalorder %s30_s16, 0 }
   0xa   : > { %p388_p8 = scmp.lt.s32.totalorder %s520_s11, 2  ;;  %s100_s19 = sand.u32 1, %s508_s8  }
   0xb   : > { %p577_p7 = por %p49_p5, %p48_p4  ;;  %s380_s20 = sshll.u32 %s516_s10, 6 }
   0xc   : > { %s583_s18 = scalar_select %p33_p6, %s508_s8, %s35_s14  }
   0xd   : > { %s371_s21 = sshll.u32 %s100_s19, 6  ;;  %s111_s24 = scalar_lea.hbm %s688_s0, %s380_s20 }
   0xe   : > { %s112_s25 = sshll.u32 %s111_s24, 4  ;;  %s104_s26 = scalar_lea.vmem [#allocation2], %s371_s21  ;;  %s113_s25 = int_to_ptr.hbm [resolvable:$true] %s112_s25 }
   0xf   : > { %s114_s27 = sshll.u32 %s104_s26, 4  ;;  %p385_p9 = pnand %p388_p8, %p570_p3  ;;  %s115_s27 = int_to_ptr.vmem [resolvable:$true] %s114_s27 }
  0x10   : > { %p374_p10 = scmp.ge.s32.totalorder %s520_s11, 1  ;;  %p122_p11 = scmp.lt.s32.totalorder %s520_s11, 3 }
  0x11   : > { %s101_s28 = scalar_lea.sflag [#allocation3], %s100_s19  ;;  %s522_s29 = smov 256  }
  0x12   : > { %s523_s30 = smov 16   ;;  %p123_p12 = pnand %p374_p10, %p122_p11 }
  0x13   : > { %387 = dma.hbm_to_vmem [thread:$0]  (!%p385_p9), %s113_s25, 1024, %s115_s27, %s101_s28, %s522_s29, %s522_s29, %s523_s30  }
  0x14   : > { %126 = sbr.rel (%p123_p12) target bundleno = 314 (0x13a), region = 24  ;;  %s128_s2 = sand.u32 (!%p123_p12), 1, %s504_s7  }
  0x15   : > { %s375_s3 = sshll.u32 (!%p123_p12), %s128_s2, 6  ;;  %s129_s4 = scalar_lea.sflag (!%p123_p12), [#allocation3], %s128_s2 }
  0x16   : > { %s132_s5 = scalar_lea.vmem (!%p123_p12), [#allocation2], %s375_s3 }
  0x19   : > { %495 = dma.done.wait (%p577_p7), %s129_s4, 1024  }
  0x1a   : > { %497 = vsyncadd (%p577_p7), %s129_s4, 4294966272  ;;  %v168_v0 = vld [vmem:[%s132_s5 + $0x8] sm:$0xff]  ;;  %v167_v1 = vld [vmem:[%s132_s5] sm:$0xff]  ;;  %p158_p13 = scmp.lt.s32.totalorder %s512_s9, 1  ;;  %vm239_vm0 = vcmask 261120  }
  0x1b   : > { %207 = vxpose.xlu1.b32.start [1/4] (short) %v168_v0, 128  ;;  %175 = vxpose.xlu0.b32.start [1/4] (short) %v167_v1, 128  ;;  %v170_v2 = vld [vmem:[%s132_s5 + $0x18] sm:$0xff]  ;;  %v169_v3 = vld [vmem:[%s132_s5 + $0x10] sm:$0xff]  ;;  %v172_v4 = vld [vmem:[%s132_s5 + $0x28] sm:$0xff] }
  0x1c   : > { %v171_v5 = vld [vmem:[%s132_s5 + $0x20] sm:$0xff]  ;;  %v174_v6 = vld [vmem:[%s132_s5 + $0x38] sm:$0xff]  ;;  %v173_v7 = vld [vmem:[%s132_s5 + $0x30] sm:$0xff]  ;;  %s700_s9 = smov (!%p158_p13, %s512_s9), 1 }
  0x1d   : > { %s381_s6 = sshll.u32 %s700_s9, 8 }
  0x1e   : > { %s604_s15 = scalar_lea.vmem %s689_s1, %s381_s6 }
  0x23   : > { %208 = vxpose.xlu1.b32.cont [2/4] (short) %v170_v2, 128  ;;  %176 = vxpose.xlu0.b32.cont [2/4] (short) %v169_v3, 128 }
  0x2b   : > { %209 = vxpose.xlu1.b32.cont [3/4] (short) %v172_v4, 128  ;;  %177 = vxpose.xlu0.b32.cont [3/4] (short) %v171_v5, 128 }
  0x33   : > { %210 = vxpose.xlu1.b32.end [4/4] (short) %v174_v6, 128  ;;  %178 = vxpose.xlu0.b32.end [4/4] (short) %v173_v7, 128 }
  0xbf   : > { %v223_v8 = vpop.trf.xlu1  ;;  %v191_v9 = vpop.trf.xlu0 }
  0xc0   : > { %256 = vst.msk [vmem:[%s604_s15 + $0x80] sm:$0xff] %vm239_vm0, %v223_v8 }
  0xc1   : > { %240 = vst.msk [vmem:[%s604_s15] sm:$0xff] %vm239_vm0, %v191_v9 }
  0xc7   : > { %v224_v10 = vpop.trf.xlu1  ;;  %v192_v11 = vpop.trf.xlu0 }
  0xc8   : > { %257 = vst.msk [vmem:[%s604_s15 + $0x88] sm:$0xff] %vm239_vm0, %v224_v10 }
  0xc9   : > { %241 = vst.msk [vmem:[%s604_s15 + $0x8] sm:$0xff] %vm239_vm0, %v192_v11 }
  0xcf   : > { %v225_v12 = vpop.trf.xlu1  ;;  %v193_v13 = vpop.trf.xlu0 }
  0xd0   : > { %258 = vst.msk [vmem:[%s604_s15 + $0x90] sm:$0xff] %vm239_vm0, %v225_v12 }
  0xd1   : > { %242 = vst.msk [vmem:[%s604_s15 + $0x10] sm:$0xff] %vm239_vm0, %v193_v13 }
  0xd7   : > { %v226_v14 = vpop.trf.xlu1  ;;  %v194_v15 = vpop.trf.xlu0 }
  0xd8   : > { %259 = vst.msk [vmem:[%s604_s15 + $0x98] sm:$0xff] %vm239_vm0, %v226_v14 }
  0xd9   : > { %243 = vst.msk [vmem:[%s604_s15 + $0x18] sm:$0xff] %vm239_vm0, %v194_v15 }
  0xdf   : > { %v227_v16 = vpop.trf.xlu1  ;;  %v195_v17 = vpop.trf.xlu0 }
  0xe0   : > { %260 = vst.msk [vmem:[%s604_s15 + $0xa0] sm:$0xff] %vm239_vm0, %v227_v16 }
  0xe1   : > { %244 = vst.msk [vmem:[%s604_s15 + $0x20] sm:$0xff] %vm239_vm0, %v195_v17 }
  0xe7   : > { %v228_v18 = vpop.trf.xlu1  ;;  %v196_v19 = vpop.trf.xlu0 }
  0xe8   : > { %261 = vst.msk [vmem:[%s604_s15 + $0xa8] sm:$0xff] %vm239_vm0, %v228_v18 }
  0xe9   : > { %245 = vst.msk [vmem:[%s604_s15 + $0x28] sm:$0xff] %vm239_vm0, %v196_v19 }
  0xef   : > { %v229_v20 = vpop.trf.xlu1  ;;  %v197_v21 = vpop.trf.xlu0 }
  0xf0   : > { %262 = vst.msk [vmem:[%s604_s15 + $0xb0] sm:$0xff] %vm239_vm0, %v229_v20 }
  0xf1   : > { %246 = vst.msk [vmem:[%s604_s15 + $0x30] sm:$0xff] %vm239_vm0, %v197_v21 }
  0xf7   : > { %v230_v22 = vpop.trf.xlu1  ;;  %v198_v23 = vpop.trf.xlu0 }
  0xf8   : > { %263 = vst.msk [vmem:[%s604_s15 + $0xb8] sm:$0xff] %vm239_vm0, %v230_v22 }
  0xf9   : > { %247 = vst.msk [vmem:[%s604_s15 + $0x38] sm:$0xff] %vm239_vm0, %v198_v23 }
  0xff   : > { %v231_v24 = vpop.trf.xlu1  ;;  %v199_v25 = vpop.trf.xlu0 }
 0x100   : > { %264 = vst.msk [vmem:[%s604_s15 + $0xc0] sm:$0xff] %vm239_vm0, %v231_v24 }
 0x101   : > { %248 = vst.msk [vmem:[%s604_s15 + $0x40] sm:$0xff] %vm239_vm0, %v199_v25 }
 0x107   : > { %v232_v26 = vpop.trf.xlu1  ;;  %v200_v27 = vpop.trf.xlu0 }
 0x108   : > { %265 = vst.msk [vmem:[%s604_s15 + $0xc8] sm:$0xff] %vm239_vm0, %v232_v26 }
 0x109   : > { %249 = vst.msk [vmem:[%s604_s15 + $0x48] sm:$0xff] %vm239_vm0, %v200_v27 }
 0x10f   : > { %v233_v28 = vpop.trf.xlu1  ;;  %v201_v29 = vpop.trf.xlu0 }
 0x110   : > { %266 = vst.msk [vmem:[%s604_s15 + $0xd0] sm:$0xff] %vm239_vm0, %v233_v28 }
 0x111   : > { %250 = vst.msk [vmem:[%s604_s15 + $0x50] sm:$0xff] %vm239_vm0, %v201_v29 }
 0x117   : > { %v234_v30 = vpop.trf.xlu1  ;;  %v202_v31 = vpop.trf.xlu0 }
 0x118   : > { %267 = vst.msk [vmem:[%s604_s15 + $0xd8] sm:$0xff] %vm239_vm0, %v234_v30 }
 0x119   : > { %251 = vst.msk [vmem:[%s604_s15 + $0x58] sm:$0xff] %vm239_vm0, %v202_v31 }
 0x11f   : > { %v235_v32 = vpop.trf.xlu1  ;;  %v203_v33 = vpop.trf.xlu0 }
 0x120   : > { %268 = vst.msk [vmem:[%s604_s15 + $0xe0] sm:$0xff] %vm239_vm0, %v235_v32 }
 0x121   : > { %252 = vst.msk [vmem:[%s604_s15 + $0x60] sm:$0xff] %vm239_vm0, %v203_v33 }
 0x127   : > { %v236_v34 = vpop.trf.xlu1  ;;  %v204_v35 = vpop.trf.xlu0 }
 0x128   : > { %269 = vst.msk [vmem:[%s604_s15 + $0xe8] sm:$0xff] %vm239_vm0, %v236_v34 }
 0x129   : > { %253 = vst.msk [vmem:[%s604_s15 + $0x68] sm:$0xff] %vm239_vm0, %v204_v35 }
 0x12f   : > { %v237_v36 = vpop.trf.xlu1  ;;  %v205_v37 = vpop.trf.xlu0 }
 0x130   : > { %270 = vst.msk [vmem:[%s604_s15 + $0xf0] sm:$0xff] %vm239_vm0, %v237_v36 }
 0x131   : > { %254 = vst.msk [vmem:[%s604_s15 + $0x70] sm:$0xff] %vm239_vm0, %v205_v37 }
 0x137   : > { %v238_v38 = vpop.trf.xlu1  ;;  %v206_v39 = vpop.trf.xlu0 }
 0x138   : > { %271 = vst.msk [vmem:[%s604_s15 + $0xf8] sm:$0xff] %vm239_vm0, %v238_v38 }
 0x139   : > { %255 = vst.msk [vmem:[%s604_s15 + $0x78] sm:$0xff] %vm239_vm0, %v206_v39 }
 0x13a PF: > { %s14_s11 = sadd.s32 1, %s520_s11   ;;  %s692_s6 = smov %s504_s7 }
 0x13b   : > { %p11_p0 = scmp.ge.s32.totalorder %s14_s11, 4   ;;  %s693_s7 = smov %s508_s8 }
 0x13c   : > { %s694_s8 = smov %s583_s18  ;;  %s695_s9 = smov %s516_s10 }
 0x13d   : > { %s696_s10 = smov %s698_s13  ;;  %13 = sbr.rel (!%p11_p0) target bundleno = 4 (0x4), region = 64 }
 0x142   :  { %302 = vsyncpa [#allocation3], 1 }
 0x143   :  { %304 = vsyncpa [#allocation3 + $0x1], 1 }

</bundles_post_ra>
